<compile_context>
chip_gen: v5e
topology: v5e:2x2
jax: 0.10.0
libtpu: 0.0.40
codegen_flags: <defaults>
</compile_context>

<pallas_src>
import functools
import math

import jax
import jax.numpy as jnp
from jax.experimental import pallas as pl
from jax.experimental.pallas import tpu as pltpu

LANES = 128
TARGET_BLOCK_BYTES = 8 * 1024 * 1024   # ~8 MiB of input DMA per grid step
VMEM_LIMIT_BYTES = 32 * 1024 * 1024    # covers 2 inputs x 2 buffers x 4 MiB
_EPS = 1e-6
_LOG_EPS = math.log(_EPS)              # clamp(p, eps, 1-eps) == clamp(log p, log eps, log(1-eps))
_LOG_1MEPS = math.log1p(-_EPS)


def _bce_kernel(x_ref, t_ref, out_ref, *, a, b, n_valid, block_rows, steps,
                mask_from, needs_mask):
    c = pl.program_id(0)            # TensorCore split ("parallel")
    i = pl.program_id(1)            # reduction axis ("arbitrary")
    block_idx = c * steps + i       # logical block index (may be a phantom step)

    @pl.when(i == 0)
    def _():
        out_ref[...] = jnp.zeros_like(out_ref)

    x = x_ref[...].astype(jnp.float32)
    t = t_ref[...].astype(jnp.float32)

    # Fused BCE-with-logits: one exp + one log per element (EUP slot), no
    # sigmoid/reciprocal.  Log-domain clamps == PyTorch clamp(sigmoid(x), eps, 1-eps).
    sp = jnp.maximum(x, 0.0) + jnp.log(1.0 + jnp.exp(-jnp.abs(x)))   # softplus(x)
    log_p = jnp.clip(x - sp, _LOG_EPS, _LOG_1MEPS)   # log(clamp(sigmoid(x), eps, 1-eps))
    log_q = jnp.clip(-sp, _LOG_EPS, _LOG_1MEPS)      # log(clamp(1-sigmoid(x), eps, 1-eps))
    # == a*t*log_p + b*(1-t)*log_q, with fewer VALU ops per vreg.
    term = t * (a * log_p - b * log_q) + b * log_q

    def _accum(v):
        if block_rows % 8 == 0:
            # Pure VPU adds: fold the sub-blocks onto the (8,128) accumulator.
            out_ref[...] += v.reshape(-1, 8, LANES).sum(axis=0)
        else:
            # Only reachable when the whole array is a single (<8-row) block.
            out_ref[0:1, :] += v.sum(axis=0, keepdims=True)

    if needs_mask:
        # Mask only the tail / phantom blocks; everything earlier is fully valid.
        @pl.when(block_idx >= mask_from)
        def _():
            # Zero out: (a) padded tail inside the last real block, (b) ragged-edge
            # OOB garbage (possibly NaN), (c) an entire phantom step on v7x.
            # NOTE: int32 offsets limit n_valid to < 2^31 elements (plenty for a loss).
            offset = block_idx * (block_rows * LANES)
            idx = (jax.lax.broadcasted_iota(jnp.int32, (block_rows, LANES), 0) * LANES
                   + jax.lax.broadcasted_iota(jnp.int32, (block_rows, LANES), 1))
            _accum(jnp.where(idx + offset < n_valid, term, 0.0))

        @pl.when(block_idx < mask_from)
        def _():
            _accum(term)
    else:
        _accum(term)


def bce_logits_weight(output, target, alpha=0.02):
    assert output.shape == target.shape, "Prediction and target shape mismatch"
    n = int(output.size)

    # Flatten in native dtype; the f32 cast happens inside the kernel (pass
    # bf16 logits / uint8 targets directly to cut HBM traffic).
    x = output.reshape(-1)
    t = target.reshape(-1)

    rows_raw = pl.cdiv(n, LANES)
    n_lane_pad = rows_raw * LANES
    if n_lane_pad != n:
        # Unavoidable tiny pad (<128 elems) so the flat array maps to (rows, 128).
        x = jnp.pad(x, (0, n_lane_pad - n))
        t = jnp.pad(t, (0, n_lane_pad - n))
    x2 = x.reshape(rows_raw, LANES)
    t2 = t.reshape(rows_raw, LANES)

    # Dtype-aware block sizing: ~8 MiB of input bytes per step, rows a multiple
    # of 32 (safe for f32 / bf16 / int8 sublane packing).
    bytes_per_row = LANES * (x2.dtype.itemsize + t2.dtype.itemsize)
    target_rows = max(32, (TARGET_BLOCK_BYTES // bytes_per_row) // 32 * 32)
    if rows_raw <= target_rows:
        block_rows = rows_raw           # single full-array block (always legal)
    else:
        block_rows = target_rows

    total_real_blocks = pl.cdiv(rows_raw, block_rows)
    # Always use both TensorCores (v7x) when there is more than one block; a
    # phantom step from an odd block count is clamped + masked below.
    n_splits = 2 if total_real_blocks >= 2 else 1
    steps = pl.cdiv(total_real_blocks, n_splits)
    total_grid_blocks = n_splits * steps

    tail_partial = (n != n_lane_pad) or (rows_raw % block_rows != 0)
    has_phantom = total_grid_blocks > total_real_blocks
    needs_mask = tail_partial or has_phantom
    mask_from = (total_real_blocks - 1) if tail_partial else total_real_blocks

    kernel = functools.partial(
        _bce_kernel,
        a=float(1.0 - alpha), b=float(alpha),
        n_valid=n, block_rows=block_rows, steps=steps,
        mask_from=mask_from, needs_mask=needs_mask,
    )

    last_block = total_real_blocks - 1
    # Clamp so a phantom step re-fetches the last valid block instead of
    # issuing an out-of-range DMA; its contribution is masked to zero.
    in_blk = pl.BlockSpec(
        (block_rows, LANES),
        lambda c, i: (jnp.minimum(c * steps + i, last_block), 0))

    partials = pl.pallas_call(
        kernel,
        out_shape=jax.ShapeDtypeStruct((n_splits * 8, LANES), jnp.float32),
        grid_spec=pltpu.PrefetchScalarGridSpec(
            num_scalar_prefetch=0,
            grid=(n_splits, steps),
            in_specs=[in_blk, in_blk],
            out_specs=pl.BlockSpec((8, LANES), lambda c, i: (c, 0)),
        ),
        compiler_params=pltpu.CompilerParams(
            dimension_semantics=("parallel", "arbitrary"),
            vmem_limit_bytes=VMEM_LIMIT_BYTES,
        ),
    )(x2, t2)

    # One tiny cross-lane reduction + fold the mean into a multiply by -1/N.
    return jnp.sum(partials) * jnp.float32(-1.0 / n)


def _reference(output, target, alpha=0.02):
    # Faithful translation of the PyTorch module (sigmoid -> clamp -> two logs).
    eps = 1e-6
    pred = jnp.clip(jax.nn.sigmoid(output.reshape(-1).astype(jnp.float32)), eps, 1.0 - eps)
    t = target.reshape(-1).astype(jnp.float32)
    return -jnp.mean(
        (1.0 - alpha) * t * jnp.log(pred) + alpha * (1.0 - t) * jnp.log(1.0 - pred)
    )


if __name__ == "__main__":
    key = jax.random.PRNGKey(0)
    k1, k2, k3, k4 = jax.random.split(key, 4)

    # Case 1: NCHW-shaped logits + binary mask target, size a multiple of 128.
    x1 = jax.random.normal(k1, (2, 4, 16, 16), dtype=jnp.float32) * 3.0
    t1 = (jax.random.uniform(k2, (2, 4, 16, 16)) < 0.02).astype(jnp.float32)
    loss1 = jax.block_until_ready(bce_logits_weight(x1, t1, alpha=0.02))
    ref1 = _reference(x1, t1, alpha=0.02)
    assert jnp.allclose(loss1, ref1, rtol=2e-4, atol=1e-6), (loss1, ref1)

    # Case 2: non-128-aligned size to exercise the ragged-tail masking path.
    x2 = jax.random.normal(k3, (3, 5, 10, 13), dtype=jnp.float32) * 3.0
    t2 = (jax.random.uniform(k4, (3, 5, 10, 13)) < 0.02).astype(jnp.float32)
    loss2 = jax.block_until_ready(bce_logits_weight(x2, t2, alpha=0.02))
    ref2 = _reference(x2, t2, alpha=0.02)
    assert jnp.allclose(loss2, ref2, rtol=2e-4, atol=1e-6), (loss2, ref2)

    print("KERNEL_OK")
</pallas_src>

<mosaic_0001>
module attributes {stable_mosaic.version = 11 : i64} {
  func.func @_bce_kernel(%arg0: i32, %arg1: i32, %arg2: memref<16x128xf32, #tpu.memory_space<vmem>>, %arg3: memref<16x128xf32, #tpu.memory_space<vmem>>, %arg4: memref<8x128xf32, #tpu.memory_space<vmem>>) attributes {dimension_semantics = [#tpu.dimension_semantics<parallel>, #tpu.dimension_semantics<arbitrary>], iteration_bounds = array<i64: 1, 1>, scalar_prefetch = 0 : i64, scratch_operands = 0 : i64, tpu.core_type = #tpu.core_type<tc>, window_params = [{transform_indices = @transform_0, window_bounds = array<i64: 16, 128>}, {transform_indices = @transform_1, window_bounds = array<i64: 16, 128>}, {transform_indices = @transform_2, window_bounds = array<i64: 8, 128>}]} {
    %c0_i32 = arith.constant 0 : i32
    %0 = arith.cmpi eq, %arg1, %c0_i32 : i32
    %1 = arith.extui %0 : i1 to i32
    %c0_i32_0 = arith.constant 0 : i32
    %2 = arith.cmpi ne, %1, %c0_i32_0 : i32
    scf.if %2 {
      %cst_19 = arith.constant 0.000000e+00 : f32
      %40 = vector.broadcast %cst_19 : f32 to vector<8x128xf32>
      %c0_20 = arith.constant 0 : index
      %c0_21 = arith.constant 0 : index
      %41 = vector.load %arg4[%c0_20, %c0_21] : memref<8x128xf32, #tpu.memory_space<vmem>>, vector<8x128xf32>
      tpu.vector_store %arg4[%c0_20, %c0_21], %40 {strides = array<i32>} : memref<8x128xf32, #tpu.memory_space<vmem>>, vector<8x128xf32>,
    } else {
    }
    %c0 = arith.constant 0 : index
    %c0_1 = arith.constant 0 : index
    %3 = vector.load %arg2[%c0, %c0_1] : memref<16x128xf32, #tpu.memory_space<vmem>>, vector<16x128xf32>
    %c0_2 = arith.constant 0 : index
    %c0_3 = arith.constant 0 : index
    %4 = vector.load %arg3[%c0_2, %c0_3] : memref<16x128xf32, #tpu.memory_space<vmem>>, vector<16x128xf32>
    %cst = arith.constant 0.000000e+00 : f32
    %5 = vector.broadcast %cst : f32 to vector<16x128xf32>
    %6 = arith.maximumf %3, %5 : vector<16x128xf32>
    %7 = math.absf %3 : vector<16x128xf32>
    %cst_4 = arith.constant 0.000000e+00 : f32
    %8 = vector.broadcast %cst_4 : f32 to vector<16x128xf32>
    %9 = arith.subf %8, %7 : vector<16x128xf32>
    %10 = math.exp %9 : vector<16x128xf32>
    %cst_5 = arith.constant 1.000000e+00 : f32
    %11 = vector.broadcast %cst_5 : f32 to vector<16x128xf32>
    %12 = arith.addf %11, %10 : vector<16x128xf32>
    %13 = math.log %12 : vector<16x128xf32>
    %14 = arith.addf %6, %13 : vector<16x128xf32>
    %15 = arith.subf %3, %14 : vector<16x128xf32>
    %cst_6 = arith.constant -13.8155107 : f32
    %cst_7 = arith.constant -1.00000045E-6 : f32
    %16 = vector.broadcast %cst_6 : f32 to vector<16x128xf32>
    %17 = arith.maximumf %16, %15 : vector<16x128xf32>
    %18 = vector.broadcast %cst_7 : f32 to vector<16x128xf32>
    %19 = arith.minimumf %18, %17 : vector<16x128xf32>
    %cst_8 = arith.constant 0.000000e+00 : f32
    %20 = vector.broadcast %cst_8 : f32 to vector<16x128xf32>
    %21 = arith.subf %20, %14 : vector<16x128xf32>
    %cst_9 = arith.constant -13.8155107 : f32
    %cst_10 = arith.constant -1.00000045E-6 : f32
    %22 = vector.broadcast %cst_9 : f32 to vector<16x128xf32>
    %23 = arith.maximumf %22, %21 : vector<16x128xf32>
    %24 = vector.broadcast %cst_10 : f32 to vector<16x128xf32>
    %25 = arith.minimumf %24, %23 : vector<16x128xf32>
    %cst_11 = arith.constant 9.800000e-01 : f32
    %26 = vector.broadcast %cst_11 : f32 to vector<16x128xf32>
    %27 = arith.mulf %26, %19 : vector<16x128xf32>
    %cst_12 = arith.constant 2.000000e-02 : f32
    %28 = vector.broadcast %cst_12 : f32 to vector<16x128xf32>
    %29 = arith.mulf %28, %25 : vector<16x128xf32>
    %30 = arith.subf %27, %29 : vector<16x128xf32>
    %31 = arith.mulf %4, %30 : vector<16x128xf32>
    %cst_13 = arith.constant 2.000000e-02 : f32
    %32 = vector.broadcast %cst_13 : f32 to vector<16x128xf32>
    %33 = arith.mulf %32, %25 : vector<16x128xf32>
    %34 = arith.addf %31, %33 : vector<16x128xf32>
    %c0_14 = arith.constant 0 : index
    %c0_15 = arith.constant 0 : index
    %35 = vector.load %arg4[%c0_14, %c0_15] : memref<8x128xf32, #tpu.memory_space<vmem>>, vector<8x128xf32>
    %36 = vector.shape_cast %34 : vector<16x128xf32> to vector<2x8x128xf32>
    %cst_16 = arith.constant dense<0.000000e+00> : vector<8x128xf32>
    %37 = vector.multi_reduction <add>, %36, %cst_16 [0] : vector<2x8x128xf32> to vector<8x128xf32>
    %38 = arith.addf %35, %37 : vector<8x128xf32>
    %c0_17 = arith.constant 0 : index
    %c0_18 = arith.constant 0 : index
    %39 = vector.load %arg4[%c0_17, %c0_18] : memref<8x128xf32, #tpu.memory_space<vmem>>, vector<8x128xf32>
    tpu.vector_store %arg4[%c0_17, %c0_18], %38 {strides = array<i32>} : memref<8x128xf32, #tpu.memory_space<vmem>>, vector<8x128xf32>,
    return
  }
  func.func @transform_0(%arg0: i32, %arg1: i32) -> (i32, i32) {
    %c1_i32 = arith.constant 1 : i32
    %0 = arith.muli %arg0, %c1_i32 : i32
    %1 = arith.addi %0, %arg1 : i32
    %c0_i32 = arith.constant 0 : i32
    %2 = arith.minsi %1, %c0_i32 : i32
    %c0_i32_0 = arith.constant 0 : i32
    %c0_i32_1 = arith.constant 0 : i32
    return %2, %c0_i32_0 : i32, i32
  }
  func.func @transform_1(%arg0: i32, %arg1: i32) -> (i32, i32) {
    %c1_i32 = arith.constant 1 : i32
    %0 = arith.muli %arg0, %c1_i32 : i32
    %1 = arith.addi %0, %arg1 : i32
    %c0_i32 = arith.constant 0 : i32
    %2 = arith.minsi %1, %c0_i32 : i32
    %c0_i32_0 = arith.constant 0 : i32
    %c0_i32_1 = arith.constant 0 : i32
    return %2, %c0_i32_0 : i32, i32
  }
  func.func @transform_2(%arg0: i32, %arg1: i32) -> (i32, i32) {
    %c0_i32 = arith.constant 0 : i32
    %c0_i32_0 = arith.constant 0 : i32
    return %arg0, %c0_i32 : i32, i32
  }
}

</mosaic_0001>

<bundles_post_ra>
// kernel: tpu_custom_call.1
= control target key start
LH: loop header
LB: loop body
LE: loop exit
PB: predicated region body
PF: predicated region fallthrough
CT: control target
= control target key end

     0   :  { %7 = vsyncpa [#allocation3], 0  ;;  %s260_s0 = inlined_call_operand.hbm [shape: f32[16,128], index: 0, kind: input, shape index: {}]   ;;  %s261_s1 = inlined_call_operand.hbm [shape: f32[16,128], index: 1, kind: input, shape index: {}]   ;;  %s262_s2 = inlined_call_operand.hbm [shape: f32[8,128], index: 2, kind: output, shape index: {}]  }
   0x1   :  { %8 = vsyncpa [#allocation6], 0 }
   0x2   :  { %9 = vsyncpa [#allocation4], 0  ;;  %s20_s11 = sshll.u32 %s260_s0, 4  ;;  %s231_s12 = smov [#allocation2]   ;;  %s21_s11 = int_to_ptr.hbm [resolvable:$true] %s20_s11 }
   0x3   :  { %s22_s13 = sshll.u32 %s231_s12, 4  ;;  %s39_s16 = sshll.u32 %s261_s1, 4  ;;  %s23_s13 = int_to_ptr.vmem [resolvable:$true] %s22_s13  ;;  %s40_s16 = int_to_ptr.hbm [resolvable:$true] %s39_s16 }
   0x4   :  { %s232_s17 = smov 128   ;;  %s233_s18 = smov 8  }
   0x5   :  { %28 = dma.hbm_to_vmem [thread:$0]  %s21_s11, 256, %s23_s13, [#allocation3], %s232_s17, %s232_s17, %s233_s18  }
   0x6   :  { %s234_s19 = smov [#allocation5]  }
   0x7   :  { %s41_s20 = sshll.u32 %s234_s19, 4  ;;  %s42_s20 = int_to_ptr.vmem [resolvable:$true] %s41_s20 }
   0x8   :  { %47 = dma.hbm_to_vmem [thread:$0]  %s40_s16, 256, %s42_s20, [#allocation6], %s232_s17, %s232_s17, %s233_s18  }
   0x9   :  { %225 = dma.done.wait [#allocation3], 256  }
   0xa   :  { %226 = vsyncadd [#allocation3], 4294967040 }
   0xb   :  { %227 = dma.done.wait [#allocation6], 256  }
   0xc   :  { %228 = vsyncadd [#allocation6], 4294967040  ;;  %v69_v0 = vld [vmem:[#allocation2] sm:$0xff]  ;;  %v70_v1 = vld [vmem:[#allocation2 + $0x8] sm:$0xff]  ;;  %s235_s0 = smov [#allocation7]   ;;  %s124_s23 = sshll.u32 %s262_s2, 4  ;;  %s125_s23 = int_to_ptr.hbm [resolvable:$true] %s124_s23 }
   0xd   :  { %v75_v2 = vand.u32 2147483647, %v69_v0  ;;  %v76_v3 = vand.u32 2147483647, %v70_v1  ;;  %v73_v12 = vmax.f32 %v69_v0, 0.0  ;;  %v74_v14 = vmax.f32 %v70_v1, 0.0 }
   0xe   :  { %v71_v34 = vld [vmem:[#allocation5] sm:$0xff]  ;;  %v72_v37 = vld [vmem:[#allocation5 + $0x8] sm:$0xff]  ;;  %s122_s1 = sshll.u32 %s235_s0, 4  ;;  %s123_s1 = int_to_ptr.vmem [resolvable:$true] %s122_s1 }
   0xf   :  { %v77_v4 = vsub.f32 0.0, %v75_v2  ;;  %v78_v5 = vsub.f32 0.0, %v76_v3 }
  0x11   :  { %v79_v6 = vmul.f32 1.442695, %v77_v4  ;;  %v81_v7 = vmul.f32 1.442695, %v78_v5 }
  0x13   :  { %145 = vpow2.f32 %v79_v6 }
  0x14   :  { %147 = vpow2.f32 %v81_v7 }
  0x19   :  { %v146_v8 = vpop.eup %145 }
  0x1a   :  { %v148_v9 = vpop.eup %147  ;;  %v83_v10 = vadd.f32 1.0, %v146_v8 }
  0x1b   :  { %v84_v11 = vadd.f32 1.0, %v148_v9 }
  0x1c   :  { %149 = vlog2.f32 %v83_v10 }
  0x1d   :  { %151 = vlog2.f32 %v84_v11 }
  0x22   :  { %v150_v13 = vpop.eup %149 }
  0x23   :  { %v152_v15 = vpop.eup %151  ;;  %v86_v16 = vmul.f32 0.6931472, %v150_v13 }
  0x24   :  { %v88_v17 = vmul.f32 0.6931472, %v152_v15 }
  0x25   :  { %v89_v18 = vadd.f32 %v86_v16, %v73_v12 }
  0x26   :  { %v90_v19 = vadd.f32 %v88_v17, %v74_v14 }
  0x27   :  { %v91_v20 = vsub.f32 %v69_v0, %v89_v18  ;;  %v97_v21 = vsub.f32 0.0, %v89_v18 }
  0x28   :  { %v92_v22 = vsub.f32 %v70_v1, %v90_v19  ;;  %v98_v23 = vsub.f32 0.0, %v90_v19 }
  0x29   :  { %v93_v24 = vmax.f32 %v91_v20, -13.815511  ;;  %v99_v25 = vmax.f32 %v97_v21, -13.815511 }
  0x2a   :  { %v94_v26 = vmax.f32 %v92_v22, -13.815511  ;;  %v100_v27 = vmax.f32 %v98_v23, -13.815511 }
  0x2b   :  { %v95_v28 = vmin.f32 %v93_v24, -1.0000005e-06  ;;  %v101_v29 = vmin.f32 %v99_v25, -1.0000005e-06 }
  0x2c   :  { %v96_v30 = vmin.f32 %v94_v26, -1.0000005e-06  ;;  %v102_v31 = vmin.f32 %v100_v27, -1.0000005e-06 }
  0x2d   :  { %v103_v32 = vmul.f32 0.98, %v95_v28  ;;  %v105_v33 = vmul.f32 0.02, %v101_v29 }
  0x2e   :  { %v104_v35 = vmul.f32 0.98, %v96_v30  ;;  %v106_v36 = vmul.f32 0.02, %v102_v31 }
  0x2f   :  { %v107_v38 = vsub.f32 %v103_v32, %v105_v33 }
  0x30   :  { %v108_v39 = vsub.f32 %v104_v35, %v106_v36 }
  0x31   :  { %v109_v40 = vmul.f32 %v107_v38, %v71_v34 }
  0x32   :  { %v110_v41 = vmul.f32 %v108_v39, %v72_v37 }
  0x33   :  { %v111_v42 = vadd.f32 %v109_v40, %v105_v33 }
  0x34   :  { %v112_v43 = vadd.f32 %v110_v41, %v106_v36 }
  0x36   :  { %v114_v44 = vadd.f32 %v112_v43, %v111_v42 }
  0x38   :  { %116 = vst [vmem:[#allocation7] sm:$0xff] %v114_v44 }
  0x39   :  { %127 = dma.vmem_to_hbm [thread:$0]  %s123_s1, 128, %s125_s23, [#allocation4]  }
  0x3a   :  { %229 = dma.done.wait [#allocation4], 128  }
  0x3b   :  { %230 = vsyncadd [#allocation4], 4294967168 }
  0x3c   :  { %132 = vsyncpa [#allocation3], 1 }
  0x3d   :  { %133 = vsyncpa [#allocation6], 1 }
  0x3e   :  { %134 = vsyncpa [#allocation4], 1 }

</bundles_post_ra>
